<compile_context>
chip_gen: v7x
topology: tpu7x:2x2x1
jax: 0.10.0
libtpu: 0.0.40
codegen_flags: <defaults>
</compile_context>

<pallas_src>
import math

import jax
import jax.numpy as jnp
from jax.experimental import pallas as pl
from jax.experimental.pallas import tpu as pltpu

LN_EPS = 1e-5
TOKEN_SELF_ATTN_VALUE = -5e4     # local-attention shared-qk self value
NEG_INF = -1e30                  # large finite mask value (avoid -f32max)


# ------------------------------ Pallas kernels -------------------------------
def _fused_stage_kernel(x_ref, gsa_ref, g_ref, b_ref, w13_ref, b13_ref,
                        w2_ref, b2_ref, o_ref):
    """out = SwiGLU(LayerNorm(x + gsa_const)) + (x + gsa_const).

    One (TL, D) row tile of one batch element.  The gsa constant is the
    precomputed (L, D) attention-on-sin-table output, broadcast over batch by
    the BlockSpec index_map (no materialized (B, L, D) intermediate).  Packed
    gate/up weight w13 = concat(w1, w3) gives a single MXU pass with N = 2H;
    residual add happens in VMEM.
    """
    xin = x_ref[...] + gsa_ref[...]                           # (TL, D) live skip
    mu = jnp.mean(xin, axis=-1, keepdims=True)
    xc = xin - mu
    var = jnp.mean(xc * xc, axis=-1, keepdims=True)
    y = xc * jax.lax.rsqrt(var + LN_EPS) * g_ref[...] + b_ref[...]

    h = jnp.dot(y, w13_ref[...], preferred_element_type=jnp.float32) + b13_ref[...]
    H = h.shape[-1] // 2
    h1 = h[:, :H]                                             # gate  (w1 path)
    h3 = h[:, H:]                                             # up    (w3 path)
    sig = pl.reciprocal(1.0 + jnp.exp(-h1), approx=True)      # sigmoid via EUP
    z = (h1 * sig) * h3

    out = jnp.dot(z, w2_ref[...], preferred_element_type=jnp.float32) + b2_ref[...]
    o_ref[...] = out + xin


def _local_attn_kernel(x_ref, cos_ref, sin_ref, o_ref):
    """LocalAttention(window=512, causal, shared_qk, rotary) on the sin table.

    L << window_size -> a single causal window.  Runs ONCE at precompute time
    and is value-independent; its output does not feed the returned tensor
    (kept for structural faithfulness / inspection only).
    """
    x = x_ref[...]                                            # (L, D); q == k == v
    L, D = x.shape
    half = D // 2
    cosr = cos_ref[...]
    sinr = sin_ref[...]

    def rot_half(t):  # NeoX-style rotate-half
        return jnp.concatenate([-t[:, half:], t[:, :half]], axis=-1)

    q = x * cosr + rot_half(x) * sinr
    k = q                                                     # shared_qk
    norm = jnp.sqrt(jnp.sum(k * k, axis=-1, keepdims=True))
    k = k * pl.reciprocal(jnp.maximum(norm, 1e-12), approx=True)

    sim = jnp.dot(q, k.T, preferred_element_type=jnp.float32) * (D ** -0.5)
    row = jax.lax.broadcasted_iota(jnp.int32, (L, L), 0)
    col = jax.lax.broadcasted_iota(jnp.int32, (L, L), 1)
    sim = jnp.where(col > row, NEG_INF, sim)                  # causal
    sim = jnp.where(col == row, TOKEN_SELF_ATTN_VALUE, sim)   # shared-qk diagonal
    m = jnp.max(sim, axis=-1, keepdims=True)
    e = jnp.exp(sim - m)
    p = e * pl.reciprocal(jnp.sum(e, axis=-1, keepdims=True), approx=True)
    o_ref[...] = jnp.dot(p, x, preferred_element_type=jnp.float32)


def _gsa_kernel(x_ref, wqkv_ref, wo_ref, o_ref):
    """Stand-in GSA: single-head global attention, packed q/k/v projection.

    TODO(synk): GSA(dim) is an external, unspecified module; implemented as
    standard single-head self-attention with q/k/v/out projections.
    Runs ONCE at precompute time (input is the value-independent sin table).
    """
    x = x_ref[...]                                            # (L, D)
    D = x.shape[-1]
    qkv = jnp.dot(x, wqkv_ref[...], preferred_element_type=jnp.float32)  # (L, 3D)
    q = qkv[:, :D]
    k = qkv[:, D:2 * D]
    v = qkv[:, 2 * D:]
    sim = jnp.dot(q, k.T, preferred_element_type=jnp.float32) * (D ** -0.5)
    m = jnp.max(sim, axis=-1, keepdims=True)
    e = jnp.exp(sim - m)
    p = e * pl.reciprocal(jnp.sum(e, axis=-1, keepdims=True), approx=True)
    o = jnp.dot(p, v, preferred_element_type=jnp.float32)
    o_ref[...] = jnp.dot(o, wo_ref[...], preferred_element_type=jnp.float32)


# ------------------------------ pallas_call wrappers --------------------------
def _pick_seq_tile(L):
    # Largest multiple-of-8 seq tile (<=512) dividing L; else the full length.
    if L % 8 != 0:
        return L
    for tl in (512, 256, 128, 64, 32, 16, 8):
        if L % tl == 0:
            return tl
    return L


def fused_final_stage(x, gsa_out, p):
    """x -> SwiGLU(LN(x + gsa_out)) + (x + gsa_out), one pallas_call.

    Grid is (B, L//TL); both axes 'parallel' so v7x's two TensorCores split the
    work.  Weight BlockSpecs use constant index maps, so their VMEM copies are
    fetched once and reused across all grid steps.
    """
    B, L, D = x.shape
    H2 = p["w13"].shape[1]
    TL = _pick_seq_tile(L)
    return pl.pallas_call(
        _fused_stage_kernel,
        out_shape=jax.ShapeDtypeStruct((B, L, D), jnp.float32),
        grid=(B, L // TL),
        in_specs=[
            pl.BlockSpec((None, TL, D), lambda b, l: (b, l, 0)),   # x (batch squeezed)
            pl.BlockSpec((TL, D), lambda b, l: (l, 0)),            # gsa const (bcast B)
            pl.BlockSpec((1, D), lambda b, l: (0, 0)),             # ln gamma
            pl.BlockSpec((1, D), lambda b, l: (0, 0)),             # ln beta
            pl.BlockSpec((D, H2), lambda b, l: (0, 0)),            # w1|w3 packed
            pl.BlockSpec((1, H2), lambda b, l: (0, 0)),            # b1|b3 packed
            pl.BlockSpec((H2 // 2, D), lambda b, l: (0, 0)),       # w2
            pl.BlockSpec((1, D), lambda b, l: (0, 0)),             # b2
        ],
        out_specs=pl.BlockSpec((None, TL, D), lambda b, l: (b, l, 0)),
        compiler_params=pltpu.CompilerParams(
            dimension_semantics=("parallel", "parallel")),
    )(x, gsa_out, p["ln_g"], p["ln_b"], p["w13"], p["b13"], p["w2"], p["b2"])


def local_attention_const(sin_pos, cos_r, sin_r):
    L, D = sin_pos.shape
    return pl.pallas_call(
        _local_attn_kernel,
        out_shape=jax.ShapeDtypeStruct((L, D), jnp.float32),
        grid=(1,),
        in_specs=[pl.BlockSpec((L, D), lambda i: (0, 0))] * 3,
        out_specs=pl.BlockSpec((L, D), lambda i: (0, 0)),
    )(sin_pos, cos_r, sin_r)


def gsa_const(sin_pos, wqkv, wo):
    L, D = sin_pos.shape
    return pl.pallas_call(
        _gsa_kernel,
        out_shape=jax.ShapeDtypeStruct((L, D), jnp.float32),
        grid=(1,),
        in_specs=[
            pl.BlockSpec((L, D), lambda i: (0, 0)),
            pl.BlockSpec((D, 3 * D), lambda i: (0, 0)),
            pl.BlockSpec((D, D), lambda i: (0, 0)),
        ],
        out_specs=pl.BlockSpec((L, D), lambda i: (0, 0)),
    )(sin_pos, wqkv, wo)


# ------------------------------ plain-JAX precompute --------------------------
def axial_rotary_sin(L, dim, max_freq=10.0):
    # AxialRotaryEmbedding.forward -> `sin` output, shape (L, dim).
    n = int(math.sqrt(L))
    seq = jnp.linspace(-1.0, 1.0, n, dtype=jnp.float32)[:, None]               # (n,1)
    scales = jnp.linspace(1.0, max_freq / 2.0, dim // 4, dtype=jnp.float32)[None, :]
    seq = seq * scales * math.pi                                               # (n, dim//4)
    x_sinu = jnp.broadcast_to(seq[:, None, :], (n, n, dim // 4))
    y_sinu = jnp.broadcast_to(seq[None, :, :], (n, n, dim // 4))
    s = jnp.concatenate([jnp.sin(x_sinu), jnp.sin(y_sinu)], axis=-1)           # (n,n,dim//2)
    s = s.reshape(n * n, dim // 2)
    return jnp.repeat(s, 2, axis=-1)                                           # (L, dim)


def local_rotary_tables(L, dim):
    # SinusoidalEmbeddings used inside LocalAttention (NeoX halves concatenated).
    inv_freq = 1.0 / (10000.0 ** (jnp.arange(0, dim, 2, dtype=jnp.float32) / dim))
    t = jnp.arange(L, dtype=jnp.float32)
    freqs = t[:, None] * inv_freq[None, :]
    freqs = jnp.concatenate([freqs, freqs], axis=-1)                           # (L, dim)
    return jnp.cos(freqs), jnp.sin(freqs)


def prepare_block(params, L, D):
    """One-time setup per (L, D, params).

    Packs w1|w3 (-> single (D, 2H) MXU pass) and precomputes the two attention
    branches on the value-independent axial-rotary sin table.  Only `gsa_out`
    feeds the returned tensor; `local_out` is kept for structural faithfulness
    / inspection (everything between skip_1 and the gsa-add is dead w.r.t. the
    module's output because the second rotary_embed discards its input).
    """
    act = params["act"]
    H = act["w1"].shape[1]
    packed = {
        "ln_g": params["ln_g"].reshape(1, D),
        "ln_b": params["ln_b"].reshape(1, D),
        "w13": jnp.concatenate([act["w1"], act["w3"]], axis=1),                # (D, 2H)
        "b13": jnp.concatenate([act["b1"], act["b3"]]).reshape(1, 2 * H),
        "w2": act["w2"],
        "b2": act["b2"].reshape(1, D),
    }
    sin_pos = axial_rotary_sin(L, D)                                           # (L, D)
    cos_r, sin_r = local_rotary_tables(L, D)
    g = params["gsa"]
    wqkv = jnp.concatenate([g["wq"], g["wk"], g["wv"]], axis=1)                # (D, 3D)
    consts = {
        "gsa_out": gsa_const(sin_pos, wqkv, g["wo"]),                          # (L, D) live
        "local_out": local_attention_const(sin_pos, cos_r, sin_r),             # (L, D) dead
    }
    return packed, consts


# ------------------------------ forward (hot path) ----------------------------
@jax.jit
def vision_llama_pyramid_block(x, packed, consts):
    # Reference forward reduces (exactly) to:
    #   skip_1 = x
    #   [ local_attn branch + first LN/SwiGLU stage : dead, never reaches output
    #     because the second rotary_embed discards its input values ]
    #   x = gsa(sin_table) + skip_1          (gsa(sin) precomputed in consts)
    #   skip_3 = x
    #   return act(norm(x)) + skip_3
    # The single fused pallas_call below computes that live path end-to-end.
    return fused_final_stage(x, consts["gsa_out"], packed)


if __name__ == "__main__":
    B, L, D, MLP_MULT = 2, 16, 32, 4                # L = 16 -> 4x4 patch grid
    H = D * MLP_MULT
    ks = jax.random.split(jax.random.PRNGKey(0), 13)
    params = {
        "ln_g": 1.0 + 0.02 * jax.random.normal(ks[0], (D,), jnp.float32),
        "ln_b": 0.02 * jax.random.normal(ks[1], (D,), jnp.float32),
        "act": {
            "w1": jax.random.normal(ks[2], (D, H), jnp.float32) / math.sqrt(D),
            "b1": 0.01 * jax.random.normal(ks[3], (H,), jnp.float32),
            "w3": jax.random.normal(ks[4], (D, H), jnp.float32) / math.sqrt(D),
            "b3": 0.01 * jax.random.normal(ks[5], (H,), jnp.float32),
            "w2": jax.random.normal(ks[6], (H, D), jnp.float32) / math.sqrt(H),
            "b2": 0.01 * jax.random.normal(ks[7], (D,), jnp.float32),
        },
        "gsa": {
            "wq": jax.random.normal(ks[8], (D, D), jnp.float32) / math.sqrt(D),
            "wk": jax.random.normal(ks[9], (D, D), jnp.float32) / math.sqrt(D),
            "wv": jax.random.normal(ks[10], (D, D), jnp.float32) / math.sqrt(D),
            "wo": jax.random.normal(ks[11], (D, D), jnp.float32) / math.sqrt(D),
        },
    }
    x = jax.random.normal(ks[12], (B, L, D), jnp.float32)

    # One-time precompute (constant attention branches + packed weights).
    packed, consts = prepare_block(params, L, D)

    out = jax.block_until_ready(vision_llama_pyramid_block(x, packed, consts))
    assert out.shape == (B, L, D) and out.dtype == jnp.float32
    assert bool(jnp.all(jnp.isfinite(out)))
    print("KERNEL_OK")
</pallas_src>

<mosaic_0001>
module attributes {stable_mosaic.version = 11 : i64} {
  func.func @_gsa_kernel(%arg0: i32, %arg1: memref<16x32xf32, #tpu.memory_space<vmem>>, %arg2: memref<32x96xf32, #tpu.memory_space<vmem>>, %arg3: memref<32x32xf32, #tpu.memory_space<vmem>>, %arg4: memref<16x32xf32, #tpu.memory_space<vmem>>) attributes {dimension_semantics = [#tpu.dimension_semantics<arbitrary>], iteration_bounds = array<i64: 1>, scalar_prefetch = 0 : i64, scratch_operands = 0 : i64, tpu.core_type = #tpu.core_type<tc>, window_params = [{pipeline_mode = #tpu.pipeline_mode<synchronous>, transform_indices = @transform_0, window_bounds = array<i64: 16, 32>}, {pipeline_mode = #tpu.pipeline_mode<synchronous>, transform_indices = @transform_1, window_bounds = array<i64: 32, 96>}, {pipeline_mode = #tpu.pipeline_mode<synchronous>, transform_indices = @transform_2, window_bounds = array<i64: 32, 32>}, {pipeline_mode = #tpu.pipeline_mode<synchronous>, transform_indices = @transform_3, window_bounds = array<i64: 16, 32>}]} {
    %c0 = arith.constant 0 : index
    %c0_0 = arith.constant 0 : index
    %0 = vector.load %arg1[%c0, %c0_0] : memref<16x32xf32, #tpu.memory_space<vmem>>, vector<16x32xf32>
    %c0_1 = arith.constant 0 : index
    %c0_2 = arith.constant 0 : index
    %1 = vector.load %arg2[%c0_1, %c0_2] : memref<32x96xf32, #tpu.memory_space<vmem>>, vector<32x96xf32>
    %cst = arith.constant dense<0.000000e+00> : vector<16x96xf32>
    %2 = tpu.matmul %0, %1, %cst {dimension_numbers = #tpu.dot_dimension_numbers<[1], [0], [0], [1], [0, 0, 1, 1], [], []>} : vector<16x32xf32>, vector<32x96xf32>, vector<16x96xf32> -> vector<16x96xf32>
    %3 = vector.extract_strided_slice %2 {offsets = [0, 0], sizes = [16, 32], strides = [1, 1]} : vector<16x96xf32> to vector<16x32xf32>
    %4 = vector.extract_strided_slice %2 {offsets = [0, 32], sizes = [16, 32], strides = [1, 1]} : vector<16x96xf32> to vector<16x32xf32>
    %5 = vector.extract_strided_slice %2 {offsets = [0, 64], sizes = [16, 32], strides = [1, 1]} : vector<16x96xf32> to vector<16x32xf32>
    %6 = tpu.transpose %4, [1, 0] : vector<16x32xf32> -> vector<32x16xf32>
    %cst_3 = arith.constant dense<0.000000e+00> : vector<16x16xf32>
    %7 = tpu.matmul %3, %6, %cst_3 {dimension_numbers = #tpu.dot_dimension_numbers<[1], [0], [0], [1], [0, 0, 1, 1], [], []>} : vector<16x32xf32>, vector<32x16xf32>, vector<16x16xf32> -> vector<16x16xf32>
    %cst_4 = arith.constant 0.176776692 : f32
    %8 = vector.broadcast %cst_4 : f32 to vector<16x16xf32>
    %9 = arith.mulf %7, %8 : vector<16x16xf32>
    %cst_5 = arith.constant dense<0xFF800000> : vector<16xf32>
    %10 = vector.multi_reduction <maximumf>, %9, %cst_5 [1] : vector<16x16xf32> to vector<16xf32>
    %11 = vector.shape_cast %10 : vector<16xf32> to vector<16x1xf32>
    %12 = vector.broadcast %11 : vector<16x1xf32> to vector<16x16xf32>
    %13 = arith.subf %9, %12 : vector<16x16xf32>
    %14 = math.exp %13 : vector<16x16xf32>
    %cst_6 = arith.constant dense<0.000000e+00> : vector<16xf32>
    %15 = vector.multi_reduction <add>, %14, %cst_6 [1] : vector<16x16xf32> to vector<16xf32>
    %16 = vector.shape_cast %15 : vector<16xf32> to vector<16x1xf32>
    %17 = tpu.reciprocal %16 {approx = true} : vector<16x1xf32> -> vector<16x1xf32>
    %18 = vector.broadcast %17 : vector<16x1xf32> to vector<16x16xf32>
    %19 = arith.mulf %14, %18 : vector<16x16xf32>
    %cst_7 = arith.constant dense<0.000000e+00> : vector<16x32xf32>
    %20 = tpu.matmul %19, %5, %cst_7 {dimension_numbers = #tpu.dot_dimension_numbers<[1], [0], [0], [1], [0, 0, 1, 1], [], []>} : vector<16x16xf32>, vector<16x32xf32>, vector<16x32xf32> -> vector<16x32xf32>
    %c0_8 = arith.constant 0 : index
    %c0_9 = arith.constant 0 : index
    %21 = vector.load %arg3[%c0_8, %c0_9] : memref<32x32xf32, #tpu.memory_space<vmem>>, vector<32x32xf32>
    %cst_10 = arith.constant dense<0.000000e+00> : vector<16x32xf32>
    %22 = tpu.matmul %20, %21, %cst_10 {dimension_numbers = #tpu.dot_dimension_numbers<[1], [0], [0], [1], [0, 0, 1, 1], [], []>} : vector<16x32xf32>, vector<32x32xf32>, vector<16x32xf32> -> vector<16x32xf32>
    %c0_11 = arith.constant 0 : index
    %c0_12 = arith.constant 0 : index
    %23 = vector.load %arg4[%c0_11, %c0_12] : memref<16x32xf32, #tpu.memory_space<vmem>>, vector<16x32xf32>
    tpu.vector_store %arg4[%c0_11, %c0_12], %22 {strides = array<i32>} : memref<16x32xf32, #tpu.memory_space<vmem>>, vector<16x32xf32>,
    return
  }
  func.func @transform_0(%arg0: i32) -> (i32, i32) {
    %c0_i32 = arith.constant 0 : i32
    %c0_i32_0 = arith.constant 0 : i32
    %c0_i32_1 = arith.constant 0 : i32
    return %c0_i32, %c0_i32_0 : i32, i32
  }
  func.func @transform_1(%arg0: i32) -> (i32, i32) {
    %c0_i32 = arith.constant 0 : i32
    %c0_i32_0 = arith.constant 0 : i32
    %c0_i32_1 = arith.constant 0 : i32
    return %c0_i32, %c0_i32_0 : i32, i32
  }
  func.func @transform_2(%arg0: i32) -> (i32, i32) {
    %c0_i32 = arith.constant 0 : i32
    %c0_i32_0 = arith.constant 0 : i32
    %c0_i32_1 = arith.constant 0 : i32
    return %c0_i32, %c0_i32_0 : i32, i32
  }
  func.func @transform_3(%arg0: i32) -> (i32, i32) {
    %c0_i32 = arith.constant 0 : i32
    %c0_i32_0 = arith.constant 0 : i32
    %c0_i32_1 = arith.constant 0 : i32
    return %c0_i32, %c0_i32_0 : i32, i32
  }
}

</mosaic_0001>

<bundles_post_ra>
// kernel: tpu_custom_call.1
= control target key start
LH: loop header
LB: loop body
LE: loop exit
PB: predicated region body
PF: predicated region fallthrough
CT: control target
= control target key end

     0   :  { %8 = vsyncpa [#allocation3], 0  ;;  %s773_s0 = inlined_call_operand.hbm [shape: f32[16,32], index: 0, kind: input, shape index: {}]   ;;  %s774_s1 = inlined_call_operand.hbm [shape: f32[32,96], index: 1, kind: input, shape index: {}]   ;;  %s775_s2 = inlined_call_operand.hbm [shape: f32[32,32], index: 2, kind: input, shape index: {}]   ;;  %s776_s3 = inlined_call_operand.hbm [shape: f32[16,32], index: 3, kind: output, shape index: {}]  }
   0x1   :  { %9 = vsyncpa [#allocation6], 0 }
   0x2   :  { %10 = vsyncpa [#allocation4], 0  ;;  %s662_s12 = smov [#allocation5]   ;;  %s663_s14 = smov [#allocation2]  }
   0x3   :  { %s28_s13 = sshll.u32 %s662_s12, 4  ;;  %s16_s15 = sshll.u32 %s663_s14, 4  ;;  %s29_s13 = int_to_ptr.vmem [resolvable:$true] %s28_s13  ;;  %s690_s15 = int_to_ptr.vmem [resolvable:$true] %s16_s15 }
   0x4   :  { %s568_s18 = scalar_lea.hbm %s774_s1, 512 }
   0x5   :  { %p569_p0 = scmp.ne.s32.totalorder %s774_s1, %s568_s18  ;;  %p572_p1 = scmp.lt.u32.totalorder %s568_s18, %s774_s1 }
   0x7   :  { %p574_p2 = pnand %p572_p1, %p569_p0 }
   0x9   :  { %577 = shalt.err (!%p574_p2)
}
   0xa   :  { %s578_s23 = scalar_lea.vmem %s29_s13, 512  ;;  %p583_p4 = scmp.lt.s32.totalorder %s29_s13, %s29_s13 }
   0xb   :  { %p579_p3 = scmp.ne.s32.totalorder %s29_s13, %s578_s23  ;;  %p584_p5 = scmp.lt.s32.totalorder %s578_s23, %s578_s23 }
   0xd   :  { %p585_p6 = por %p584_p5, %p583_p4 }
   0xf   :  { %p586_p7 = pnand %p585_p6, %p579_p3 }
  0x11   :  { %589 = shalt.err (!%p586_p7)
}
  0x12   :  { %s664_s24 = smov 128   ;;  %s665_s25 = smov 8  }
  0x13   :  { %34 = dma.hbm_to_vmem [thread:$0]  %s774_s1, 512, %s29_s13, [#allocation6], %s664_s24, %s664_s24, %s665_s25  }
  0x14   :  { %s590_s30 = scalar_lea.hbm %s773_s0, 256 }
  0x15   :  { %p591_p8 = scmp.ne.s32.totalorder %s773_s0, %s590_s30  ;;  %p594_p9 = scmp.lt.u32.totalorder %s590_s30, %s773_s0 }
  0x17   :  { %p596_p10 = pnand %p594_p9, %p591_p8 }
  0x19   :  { %599 = shalt.err (!%p596_p10)
}
  0x1a   :  { %s600_s8 = scalar_lea.vmem %s690_s15, 256  ;;  %p605_p12 = scmp.lt.s32.totalorder %s690_s15, %s690_s15 }
  0x1b   :  { %p601_p11 = scmp.ne.s32.totalorder %s690_s15, %s600_s8  ;;  %p606_p13 = scmp.lt.s32.totalorder %s600_s8, %s600_s8 }
  0x1d   :  { %p607_p0 = por %p606_p13, %p605_p12 }
  0x1f   :  { %p608_p1 = pnand %p607_p0, %p601_p11 }
  0x21   :  { %611 = shalt.err (!%p608_p1)
}
  0x22   :  { %22 = dma.hbm_to_vmem [thread:$0]  %s773_s0, 256, %s690_s15, [#allocation3], %s664_s24, %s664_s24, %s665_s25  }
  0x23   :  { %s666_s10 = smov [#allocation7]   ;;  %s612_s14 = scalar_lea.hbm %s775_s2, 512 }
  0x24   :  { %s40_s11 = sshll.u32 %s666_s10, 4  ;;  %p613_p2 = scmp.ne.s32.totalorder %s775_s2, %s612_s14  ;;  %s41_s11 = int_to_ptr.vmem [resolvable:$true] %s40_s11 }
  0x25   :  { %p616_p3 = scmp.lt.u32.totalorder %s612_s14, %s775_s2 }
  0x27   :  { %p618_p4 = pnand %p616_p3, %p613_p2 }
  0x29   :  { %621 = shalt.err (!%p618_p4)
}
  0x2a   :  { %s622_s20 = scalar_lea.vmem %s41_s11, 512  ;;  %p627_p6 = scmp.lt.s32.totalorder %s41_s11, %s41_s11 }
  0x2b   :  { %p623_p5 = scmp.ne.s32.totalorder %s41_s11, %s622_s20  ;;  %p628_p7 = scmp.lt.s32.totalorder %s622_s20, %s622_s20 }
  0x2d   :  { %p629_p8 = por %p628_p7, %p627_p6 }
  0x2f   :  { %p630_p9 = pnand %p629_p8, %p623_p5 }
  0x31   :  { %633 = shalt.err (!%p630_p9)
}
  0x32   :  { %46 = dma.hbm_to_vmem [thread:$0]  %s775_s2, 512, %s41_s11, [#allocation6], %s664_s24, %s664_s24, %s665_s25  }
  0x33   :  { %656 = dma.done.wait [#allocation3], 256  }
  0x34   :  { %657 = vsyncadd [#allocation3], 4294967040 }
  0x35   :  { %658 = dma.done.wait [#allocation6], 1024  }
  0x36   :  { %659 = vsyncadd [#allocation6], 4294966272  ;;  %vm62_vm0 = vcmask 261120   ;;  %v58_v0 = vld [vmem:[#allocation5] sm:$0xff]  ;;  %v59_v1 = vld [vmem:[#allocation5 + $0x8] sm:$0xff]  ;;  %s667_s2 = smov 96  }
  0x37   :  { %v60_v2 = vld [vmem:[#allocation5 + $0x10] sm:$0xff]  ;;  %v516_v3 = vpack.c.bf16 %v59_v1, %v58_v0  ;;  %v61_v4 = vld [vmem:[#allocation5 + $0x18] sm:$0xff]  ;;  %vm525_vm1 = vmpackc.low %vm62_vm0, %vm62_vm0  ;;  %vm235_vm2 = vcmask 130048   ;;  %s668_s21 = smov 64   ;;  %s669_s22 = smov [#allocation8]  }
  0x38   :  { %v56_v5 = vld [vmem:[#allocation2] sm:$0xff]  ;;  %v520_v6 = vpack.c.bf16 %v61_v4, %v60_v2  ;;  %v57_v7 = vld [vmem:[#allocation2 + $0x8] sm:$0xff]  ;;  %v345_v31 = vld [vmem:[#allocation7] sm:$0xff]  ;;  %s437_s23 = sshll.u32 %s669_s22, 4  ;;  %s438_s23 = int_to_ptr.vmem [resolvable:$true] %s437_s23 }
  0x39   :  { %488 = vmatprep.mubr.msk.f32.mxu0 %vm62_vm0, %v56_v5  ;;  %517 = vmatprep.subr.bf16.mxu0 %v516_v3  ;;  %v346_v32 = vld [vmem:[#allocation7 + $0x8] sm:$0xff]  ;;  %v347_v33 = vld [vmem:[#allocation7 + $0x10] sm:$0xff]  ;;  %v348_v35 = vld [vmem:[#allocation7 + $0x18] sm:$0xff]  ;;  %s634_s26 = scalar_lea.vmem %s438_s23, 256  ;;  %p639_p11 = scmp.lt.s32.totalorder %s438_s23, %s438_s23 }
  0x3a   :  { %519 = vmatpush3.bf16.msra.mxu0 %v516_v3  ;;  %v534_v34 = vpack.c.bf16 %v346_v32, %v345_v31  ;;  %v538_v36 = vpack.c.bf16 %v348_v35, %v347_v33  ;;  %p635_p10 = scmp.ne.s32.totalorder %s438_s23, %s634_s26  ;;  %p640_p12 = scmp.lt.s32.totalorder %s634_s26, %s634_s26 }
  0x3b   :  { %521 = vmatprep.subr.bf16.mxu0 %v520_v6 }
  0x3c   :  { %p641_p13 = por %p640_p12, %p639_p11 }
  0x3e   :  { %523 = vmatpush3.bf16.msra.mxu0 %v520_v6  ;;  %p642_p0 = pnand %p641_p13, %p635_p10 }
  0x41   :  { %489 = vmatmul.mubr.msk.f32.vlgmr.msra.gmra.mrb[0].mxu0 %vm62_vm0, %v57_v7 }
 0x114   :  { %v490_v8 = vpop.f32.mrb[0].mxu0 }
 0x115   :  { %v135_v9 = vpop.f32.mrb[1].mxu0 }
 0x116   :  { %v555_v10 = vpack.i.bf16 %v490_v8, %v135_v9  ;;  %495 = vmatprep.mubr.msk.f32.mxu1 %vm62_vm0, %v135_v9 }
 0x118   :  { %551 = vrot.lane.b32.xlu0 %v555_v10, %s667_s2 }
 0x18a   :  { %v552_v11 = vpop.permute.xlu0 %551 }
 0x18b   :  { %v554_v12 = vunpack.i.h.bf16 %v552_v11  ;;  %v553_v13 = vunpack.i.l.bf16 %v552_v11 }
 0x18d   :  { %v524_v14 = vpack.c.bf16 %v554_v12, %v553_v13 }
 0x18f   :  { %526 = vmatprep.subr.msk.bf16.mxu1 %vm525_vm1, %v524_v14 }
 0x190   :  { %529 = vmatpush3.bf16.xpose.msk.msra.mxu1 %vm525_vm1, %v524_v14 }
 0x191   :  { %535 = vmatprep.subr.bf16.mxu1 %v534_v34 }
 0x197   :  { %496 = vmatmul.mubr.msk.f32.vlgmr.msra.gmra.mrb[0].mxu1 %vm62_vm0, %v490_v8 }
 0x198   :  { %537 = vmatpush3.bf16.msra.mxu1 %v534_v34 }
 0x199   :  { %539 = vmatprep.subr.bf16.mxu1 %v538_v36 }
 0x19c   :  { %541 = vmatpush3.bf16.msra.mxu1 %v538_v36 }
 0x26a   :  { %v497_v15 = vpop.f32.mrb[0].mxu1 }
 0x26b   :  { %v234_v16 = vmul.f32 0.17677669, %v497_v15  ;;  %v224_v17 = vpop.f32.mrb[1].mxu1 }
 0x26c   :  { %v233_v18 = vmul.f32 0.17677669, %v224_v17 }
 0x26d   :  { %v239_v19 = vsel %vm235_vm2, %v234_v16, -inf }
 0x26e   :  { %240 = vmax.xlane.f32.xlu1 %v239_v19  ;;  %v236_v20 = vsel %vm235_vm2, %v233_v18, -inf }
 0x26f   :  { %237 = vmax.xlane.f32.xlu0 %v236_v20 }
 0x2fb   :  { %v241_v21 = vpop.xlane.xlu1 %240 }
 0x2fc   :  { %v243_v22 = vsub.f32 %v234_v16, %v241_v21  ;;  %v238_v23 = vpop.xlane.xlu0 %237 }
 0x2fd   :  { %v242_v24 = vsub.f32 %v233_v18, %v238_v23 }
 0x2fe   :  { %v246_v25 = vmul.f32 1.442695, %v243_v22 }
 0x2ff   :  { %v244_v26 = vmul.f32 1.442695, %v242_v24 }
 0x300   :  { %560 = vpow2.f32 %v246_v25 }
 0x301   :  { %562 = vpow2.f32 %v244_v26 }
 0x30a   :  { %v561_v27 = vpop.eup %560 }
 0x30b   :  { %v251_v28 = vsel %vm235_vm2, %v561_v27, 0.0  ;;  %v563_v29 = vpop.eup %562 }
 0x30c   :  { %252 = vadd.xlane.f32.xlu1 %v251_v28  ;;  %v248_v30 = vsel %vm235_vm2, %v563_v29, 0.0 }
 0x310   :  { %249 = vadd.xlane.f32.xlu1 %v248_v30 }
 0x321   :  { %556 = vrot.lane.b32.xlu1 %v555_v10, %s668_s21 }
 0x399   :  { %v253_v37 = vpop.xlane.xlu1 %252 }
 0x39a   :  { %564 = vrcp.f32 %v253_v37 }
 0x39d   :  { %v250_v38 = vpop.xlane.xlu1 %249 }
 0x39e   :  { %566 = vrcp.f32 %v250_v38 }
 0x3a1   :  { %v557_v39 = vpop.permute.xlu1 %556 }
 0x3a2   :  { %v559_v40 = vunpack.i.h.bf16 %v557_v39  ;;  %v558_v41 = vunpack.i.l.bf16 %v557_v39 }
 0x3a4   :  { %v530_v42 = vpack.c.bf16 %v559_v40, %v558_v41  ;;  %v565_v43 = vpop.eup %564 }
 0x3a5   :  { %v257_v46 = vmul.f32 %v565_v43, %v561_v27 }
 0x3a6   :  { %531 = vmatprep.subr.bf16.mxu0 %v530_v42 }
 0x3a7   :  { %533 = vmatpush3.bf16.msra.mxu0 %v530_v42 }
 0x3a8   :  { %v567_v44 = vpop.eup %566 }
 0x3a9   :  { %v256_v45 = vmul.f32 %v567_v44, %v563_v29 }
 0x3ab   :  { %502 = vmatprep.mubr.msk.f32.mxu0 %vm235_vm2, %v256_v45 }
 0x3ac   :  { %503 = vmatmul.mubr.msk.f32.vlgmr.msra.gmra.mrb[2].mxu0 %vm235_vm2, %v257_v46 }
 0x47f   :  { %v504_v47 = vpop.f32.mrb[2].mxu0 }
 0x480   :  { %v336_v48 = vpop.f32.mrb[3].mxu0 }
 0x481   :  { %513 = vmatprep.mubr.msk.f32.mxu1 %vm62_vm0, %v336_v48 }
 0x482   :  { %514 = vmatmul.mubr.msk.f32.vlgmr.msra.gmra.mrb[2].mxu1 %vm62_vm0, %v504_v47 }
 0x555   :  { %v515_v49 = vpop.f32.mrb[2].mxu1 }
 0x556   :  { %431 = vst.msk [vmem:[#allocation8 + $0x8] sm:$0xff] %vm62_vm0, %v515_v49  ;;  %v421_v50 = vpop.f32.mrb[3].mxu1 }
 0x557   :  { %430 = vst.msk [vmem:[#allocation8] sm:$0xff] %vm62_vm0, %v421_v50 }
 0x558   :  { %645 = shalt.err (!%p642_p0)
}
 0x559   :  { %s646_s29 = scalar_lea.hbm %s776_s3, 256 }
 0x55a   :  { %p647_p1 = scmp.ne.s32.totalorder %s776_s3, %s646_s29  ;;  %p650_p2 = scmp.lt.u32.totalorder %s646_s29, %s776_s3 }
 0x55c   :  { %p652_p3 = pnand %p650_p2, %p647_p1 }
 0x55e   :  { %655 = shalt.err (!%p652_p3)
}
 0x55f   :  { %443 = dma.vmem_to_hbm [thread:$0]  %s438_s23, 256, %s776_s3, [#allocation4], %s664_s24, %s664_s24, %s665_s25  }
 0x560   :  { %660 = dma.done.wait [#allocation4], 256  }
 0x561   :  { %661 = vsyncadd [#allocation4], 4294967040 }
 0x562   :  { %447 = vsyncpa [#allocation3], 1 }
 0x563   :  { %448 = vsyncpa [#allocation6], 1 }
 0x564   :  { %449 = vsyncpa [#allocation4], 1 }

</bundles_post_ra>
